<compile_context>
chip_gen: v7x
topology: tpu7x:2x2x1
jax: 0.10.0
libtpu: 0.0.40
codegen_flags: <defaults>
</compile_context>

<pallas_src>
import jax
import jax.numpy as jnp
from jax.experimental import pallas as pl
from jax.experimental.pallas import tpu as pltpu


def _round_up(x, m):
    return ((x + m - 1) // m) * m


def _choose_group_size(batch, n_pad):
    """Samples per grid step.

    Pack samples so each step works on a <= 256-row block-diagonal adjacency (one full
    256-wide MXU pass on v6e/v7x, two 128-wide passes on v5e) while preferring >= 4 grid
    steps (>= 2 per v7x TensorCore under dimension_semantics=("parallel",)) so each core
    still overlaps input DMA of step i+1 with compute of step i.
    """
    divisors = [g for g in range(1, batch + 1) if batch % g == 0]
    cands = [g for g in divisors if g * n_pad <= 256] or [1]
    for min_steps in (4, 2):
        ok = [g for g in cands if batch // g >= min_steps]
        if ok:
            return max(ok)
    return max(cands)


def _gcn_corr_kernel(x_ref, w1_ref, b1_ref, w2_ref, b2_ref, out_ref):
    """Fused forward for G samples: corrcoef graph -> normalize -> 2x (GCN + ReLU)."""
    G, T, Np = x_ref.shape          # raw data block: (samples, observations, channels)
    Hp = w1_ref.shape[1]            # (padded) hidden dim
    GN = G * Np
    f32 = jnp.float32
    bf16 = jnp.bfloat16

    # ---- per-sample |corrcoef| == node features & raw adjacency ---------------------
    x = x_ref[...]                                            # (G, T, Np) f32
    xc = x - jnp.mean(x, axis=1, keepdims=True)               # center over observations
    var = jnp.sum(xc * xc, axis=1, keepdims=True)             # (G, 1, Np)
    inv_std = jnp.where(var > 0.0, jax.lax.rsqrt(var), 0.0)   # zero-variance -> 0 (nan_to_num)
    xn = xc * inv_std
    # Contract over the observation axis (dim 1 of both operands): no operand transpose
    # needed, f32 kept for conditioning of the correlation itself.
    corr = jnp.einsum("gtn,gtm->gnm", xn, xn,
                      preferred_element_type=f32)             # (G, Np, Np)
    fea = jnp.abs(jnp.clip(corr, -1.0, 1.0))                  # |nan_to_num(corrcoef)|

    # ---- symmetric normalization  L = D^-1/2 (A + I) D^-1/2 --------------------------
    ii = jax.lax.broadcasted_iota(jnp.int32, (Np, Np), 0)
    jj = jax.lax.broadcasted_iota(jnp.int32, (Np, Np), 1)
    eye = (ii == jj).astype(f32)                              # built once, broadcast over G
    a_hat = fea + eye[None, :, :]
    dinv = jax.lax.rsqrt(jnp.sum(a_hat, axis=2))              # (G, Np): single degree reduce (>= 1)
    adj_nor = a_hat * dinv[:, :, None] * dinv[:, None, :]     # a_hat symmetric -> same vector both ways

    # ---- dense (GN, GN) block-diagonal adjacency: one wide MXU operand ---------------
    if G == 1:
        bd = adj_nor.reshape(Np, Np)
    else:
        adj_flat = adj_nor.reshape(GN, Np)
        tiled = jnp.concatenate([adj_flat] * G, axis=1)       # one live source slab, (GN, GN)
        col = jax.lax.broadcasted_iota(jnp.int32, (GN, GN), 1)
        row_start = (jax.lax.broadcasted_iota(jnp.int32, (G, Np, GN), 0) * Np).reshape(GN, GN)
        in_block = jnp.logical_and(col >= row_start, col < row_start + Np)
        bd = jnp.where(in_block, tiled, 0.0)                  # single constant-mask select

    # ---- two GCN layers: bf16 MXU operands, f32 accumulation & elementwise -----------
    bd_b = bd.astype(bf16)
    fea_b = fea.reshape(GN, Np).astype(bf16)
    w1 = w1_ref[...]                                          # bf16 (cast in the wrapper)
    w2 = w2_ref[...]
    b1 = b1_ref[...]                                          # f32
    b2 = b2_ref[...]

    s1 = jnp.dot(fea_b, w1, preferred_element_type=f32)                       # (GN, Hp)
    h1 = jnp.maximum(jnp.dot(bd_b, s1.astype(bf16), preferred_element_type=f32) + b1, 0.0)
    s2 = jnp.dot(h1.astype(bf16), w2, preferred_element_type=f32)
    h2 = jnp.maximum(jnp.dot(bd_b, s2.astype(bf16), preferred_element_type=f32) + b2, 0.0)

    out_ref[...] = h2.reshape(G, Np, Hp)                      # lane-dense when Hp % 128 == 0


def gcn_encoder_forward(data, w1, b1, w2, b2):
    """Forward of Module_1: data (B, T, N) -> (B, N, hidden_dim) float32."""
    data = data.astype(jnp.float32)
    B, T, N = data.shape
    H = w1.shape[1]

    Np = _round_up(N, 8)        # sublane alignment for the in-kernel (N, N) graphs
    Hp = _round_up(H, 128)      # lane-dense output stores
    need_n_pad = Np != N
    need_h_pad = Hp != H

    x = data
    if need_n_pad:
        # Padded channels are zero-variance -> zero correlation -> isolated self-loop
        # nodes: they never influence real nodes.  (Their own output rows can carry
        # relu(bias) values; those rows are sliced off below.)
        x = jnp.pad(x, ((0, 0), (0, 0), (0, Np - N)))

    w1_f = w1.astype(jnp.float32)
    w2_f = w2.astype(jnp.float32)
    b1_f = jnp.reshape(b1, (1, -1)).astype(jnp.float32)
    b2_f = jnp.reshape(b2, (1, -1)).astype(jnp.float32)
    if need_n_pad or need_h_pad:
        w1_f = jnp.zeros((Np, Hp), jnp.float32).at[:N, :H].set(w1_f)
        w2_f = jnp.zeros((Hp, Hp), jnp.float32).at[:H, :H].set(w2_f)
        b1_f = jnp.zeros((1, Hp), jnp.float32).at[:, :H].set(b1_f)
        b2_f = jnp.zeros((1, Hp), jnp.float32).at[:, :H].set(b2_f)
    # bf16 MXU operands (f32 x f32 on the MXU costs ~3 bf16 passes); biases stay f32.
    w1_b = w1_f.astype(jnp.bfloat16)
    w2_b = w2_f.astype(jnp.bfloat16)

    G = _choose_group_size(B, Np)
    grid = (B // G,)
    GN = G * Np

    # Explicit VMEM budget: double-buffered data/output blocks, weights, biases, plus the
    # in-kernel (G,N,N)/(GN,GN)/(GN,Hp) intermediates, with 2x headroom; capped at v7x's
    # 64 MiB physical VMEM (the smallest of the three generations).
    est = (2 * G * T * Np * 4 + 2 * G * Np * Hp * 4
           + 2 * (Np * Hp + Hp * Hp) * 2 + 4 * Hp * 4
           + (4 * G * Np * Np + 3 * GN * GN + 4 * GN * Hp) * 4)
    vmem_limit = int(min(max(2 * est + (8 << 20), 32 << 20), 64 << 20))

    out = pl.pallas_call(
        _gcn_corr_kernel,
        out_shape=jax.ShapeDtypeStruct((B, Np, Hp), jnp.float32),
        grid_spec=pltpu.PrefetchScalarGridSpec(
            num_scalar_prefetch=0,
            grid=grid,
            in_specs=[
                pl.BlockSpec((G, T, Np), lambda b: (b, 0, 0)),   # raw data, native layout
                pl.BlockSpec((Np, Hp), lambda b: (0, 0)),        # W1 (bf16, grid-invariant)
                pl.BlockSpec((1, Hp), lambda b: (0, 0)),         # b1 (f32)
                pl.BlockSpec((Hp, Hp), lambda b: (0, 0)),        # W2 (bf16)
                pl.BlockSpec((1, Hp), lambda b: (0, 0)),         # b2 (f32)
            ],
            out_specs=pl.BlockSpec((G, Np, Hp), lambda b: (b, 0, 0)),
        ),
        compiler_params=pltpu.CompilerParams(
            dimension_semantics=("parallel",),
            vmem_limit_bytes=vmem_limit),
    )(x, w1_b, b1_f, w2_b, b2_f)

    if need_n_pad or need_h_pad:
        out = out[:, :N, :H]
    return out


def _reference_forward(data, w1, b1, w2, b2):
    """Pure-JAX f32 reference mirroring the PyTorch Module_1 forward."""
    data = data.astype(jnp.float32)
    x = jnp.transpose(data, (0, 2, 1))                          # (B, N, T)
    xc = x - jnp.mean(x, axis=-1, keepdims=True)
    cov = jnp.einsum("bnt,bmt->bnm", xc, xc)
    var = jnp.sum(xc * xc, axis=-1)                             # (B, N)
    denom = jnp.sqrt(var[:, :, None] * var[:, None, :])
    corr = jnp.where(denom > 0, cov / denom, 0.0)               # nan_to_num
    fea = jnp.abs(jnp.clip(corr, -1.0, 1.0))
    n = fea.shape[-1]
    a_hat = fea + jnp.eye(n, dtype=jnp.float32)
    dis = jax.lax.rsqrt(jnp.sum(a_hat, axis=-1))
    adj = a_hat * dis[:, :, None] * dis[:, None, :]
    w1 = w1.astype(jnp.float32)
    w2 = w2.astype(jnp.float32)
    h1 = jax.nn.relu(jnp.einsum("bnm,bmh->bnh", adj, fea @ w1) + b1.reshape(1, 1, -1))
    h2 = jax.nn.relu(jnp.einsum("bnm,bmh->bnh", adj, h1 @ w2) + b2.reshape(1, 1, -1))
    return h2


if __name__ == "__main__":
    # Small shapes: batch=8, observations(T)=8, channels(=input_dim)=16, hidden=32.
    B, T, N, H = 8, 8, 16, 32
    key = jax.random.PRNGKey(0)
    kd, k1, k2 = jax.random.split(key, 3)
    data = jax.random.normal(kd, (B, T, N), dtype=jnp.float32)

    # kaiming-uniform weights / zero biases, matching GraphConvolution.reset_parameters
    bound1 = (6.0 / N) ** 0.5
    bound2 = (6.0 / H) ** 0.5
    w1 = jax.random.uniform(k1, (N, H), jnp.float32, minval=-bound1, maxval=bound1)
    w2 = jax.random.uniform(k2, (H, H), jnp.float32, minval=-bound2, maxval=bound2)
    b1 = jnp.zeros((H,), jnp.float32)
    b2 = jnp.zeros((H,), jnp.float32)

    out = jax.block_until_ready(gcn_encoder_forward(data, w1, b1, w2, b2))
    ref = jax.block_until_ready(_reference_forward(data, w1, b1, w2, b2))

    assert out.shape == (B, N, H), out.shape
    assert out.dtype == jnp.float32
    assert bool(jnp.all(jnp.isfinite(out)))
    assert bool(jnp.all(out >= 0.0))                            # final ReLU
    max_err = float(jnp.max(jnp.abs(out - ref)))
    # Tolerance accounts for bf16 MXU operands (f32 accumulation) in the GCN matmuls.
    assert max_err < 1e-1, f"kernel/reference mismatch: max abs err {max_err}"
    print("KERNEL_OK")
</pallas_src>

<mosaic_0001>
module attributes {stable_mosaic.version = 11 : i64} {
  func.func @_gcn_corr_kernel(%arg0: i32, %arg1: memref<2x8x16xf32, #tpu.memory_space<vmem>>, %arg2: memref<16x128xbf16, #tpu.memory_space<vmem>>, %arg3: memref<1x128xf32, #tpu.memory_space<vmem>>, %arg4: memref<128x128xbf16, #tpu.memory_space<vmem>>, %arg5: memref<1x128xf32, #tpu.memory_space<vmem>>, %arg6: memref<2x16x128xf32, #tpu.memory_space<vmem>>) attributes {dimension_semantics = [#tpu.dimension_semantics<parallel>], iteration_bounds = array<i64: 4>, scalar_prefetch = 0 : i64, scratch_operands = 0 : i64, tpu.core_type = #tpu.core_type<tc>, window_params = [{transform_indices = @transform_0, window_bounds = array<i64: 2, 8, 16>}, {pipeline_mode = #tpu.pipeline_mode<synchronous>, transform_indices = @transform_1, window_bounds = array<i64: 16, 128>}, {pipeline_mode = #tpu.pipeline_mode<synchronous>, transform_indices = @transform_2, window_bounds = array<i64: 1, 128>}, {pipeline_mode = #tpu.pipeline_mode<synchronous>, transform_indices = @transform_3, window_bounds = array<i64: 128, 128>}, {pipeline_mode = #tpu.pipeline_mode<synchronous>, transform_indices = @transform_4, window_bounds = array<i64: 1, 128>}, {transform_indices = @transform_5, window_bounds = array<i64: 2, 16, 128>}]} {
    %c0 = arith.constant 0 : index
    %c0_0 = arith.constant 0 : index
    %c0_1 = arith.constant 0 : index
    %0 = vector.load %arg1[%c0, %c0_0, %c0_1] : memref<2x8x16xf32, #tpu.memory_space<vmem>>, vector<2x8x16xf32>
    %cst = arith.constant dense<0.000000e+00> : vector<2x16xf32>
    %1 = vector.multi_reduction <add>, %0, %cst [1] : vector<2x8x16xf32> to vector<2x16xf32>
    %2 = vector.shape_cast %1 : vector<2x16xf32> to vector<2x1x16xf32>
    %cst_2 = arith.constant 8.000000e+00 : f32
    %3 = vector.broadcast %cst_2 : f32 to vector<2x1x16xf32>
    %4 = arith.divf %2, %3 : vector<2x1x16xf32>
    %5 = vector.broadcast %4 : vector<2x1x16xf32> to vector<2x8x16xf32>
    %6 = arith.subf %0, %5 : vector<2x8x16xf32>
    %7 = arith.mulf %6, %6 : vector<2x8x16xf32>
    %cst_3 = arith.constant dense<0.000000e+00> : vector<2x16xf32>
    %8 = vector.multi_reduction <add>, %7, %cst_3 [1] : vector<2x8x16xf32> to vector<2x16xf32>
    %9 = vector.shape_cast %8 : vector<2x16xf32> to vector<2x1x16xf32>
    %cst_4 = arith.constant 0.000000e+00 : f32
    %10 = vector.broadcast %cst_4 : f32 to vector<2x1x16xf32>
    %11 = arith.cmpf ogt, %9, %10 : vector<2x1x16xf32>
    %12 = math.rsqrt %9 : vector<2x1x16xf32>
    %cst_5 = arith.constant 0.000000e+00 : f32
    %13 = vector.broadcast %cst_5 : f32 to vector<2x1x16xf32>
    %14 = arith.select %11, %12, %13 : vector<2x1x16xi1>, vector<2x1x16xf32>
    %15 = vector.broadcast %14 : vector<2x1x16xf32> to vector<2x8x16xf32>
    %16 = arith.mulf %6, %15 : vector<2x8x16xf32>
    "tpu.trace_start"() <{level = 10 : i32, message = "gtn,gtm->gnm"}> : () -> ()
    %cst_6 = arith.constant dense<0.000000e+00> : vector<2x16x16xf32>
    %17 = tpu.matmul %16, %16, %cst_6 {dimension_numbers = #tpu.dot_dimension_numbers<[1], [1], [2], [2], [0, 0, 0, 2, 1, 2], [0], [0]>} : vector<2x8x16xf32>, vector<2x8x16xf32>, vector<2x16x16xf32> -> vector<2x16x16xf32>
    %cst_7 = arith.constant -1.000000e+00 : f32
    %cst_8 = arith.constant 1.000000e+00 : f32
    "tpu.trace_stop"() : () -> ()
    %18 = vector.broadcast %cst_7 : f32 to vector<2x16x16xf32>
    %19 = arith.maximumf %18, %17 : vector<2x16x16xf32>
    %20 = vector.broadcast %cst_8 : f32 to vector<2x16x16xf32>
    %21 = arith.minimumf %20, %19 : vector<2x16x16xf32>
    %22 = math.absf %21 : vector<2x16x16xf32>
    %23 = tpu.iota {dimensions = array<i32: 0>} : vector<16x16xi32>
    %24 = tpu.iota {dimensions = array<i32: 1>} : vector<16x16xi32>
    %25 = arith.cmpi eq, %23, %24 : vector<16x16xi32>
    %26 = arith.extui %25 : vector<16x16xi1> to vector<16x16xi32>
    %27 = arith.sitofp %26 : vector<16x16xi32> to vector<16x16xf32>
    %28 = vector.shape_cast %27 : vector<16x16xf32> to vector<1x16x16xf32>
    %29 = vector.broadcast %28 : vector<1x16x16xf32> to vector<2x16x16xf32>
    %30 = arith.addf %22, %29 : vector<2x16x16xf32>
    %cst_9 = arith.constant dense<0.000000e+00> : vector<2x16xf32>
    %31 = vector.multi_reduction <add>, %30, %cst_9 [2] : vector<2x16x16xf32> to vector<2x16xf32>
    %32 = math.rsqrt %31 : vector<2x16xf32>
    %33 = vector.shape_cast %32 : vector<2x16xf32> to vector<2x16x1xf32>
    %34 = vector.broadcast %33 : vector<2x16x1xf32> to vector<2x16x16xf32>
    %35 = arith.mulf %30, %34 : vector<2x16x16xf32>
    %36 = vector.shape_cast %32 : vector<2x16xf32> to vector<2x1x16xf32>
    %37 = vector.broadcast %36 : vector<2x1x16xf32> to vector<2x16x16xf32>
    %38 = arith.mulf %35, %37 : vector<2x16x16xf32>
    %39 = vector.shape_cast %38 : vector<2x16x16xf32> to vector<32x16xf32>
    %40 = tpu.concatenate %39, %39 in 1 : vector<32x16xf32>, vector<32x16xf32> -> vector<32x32xf32>
    %41 = tpu.iota {dimensions = array<i32: 1>} : vector<32x32xi32>
    %42 = tpu.iota {dimensions = array<i32: 0>} : vector<2x16x32xi32>
    %c16_i32 = arith.constant 16 : i32
    %43 = vector.broadcast %c16_i32 : i32 to vector<2x16x32xi32>
    %44 = arith.muli %42, %43 : vector<2x16x32xi32>
    %45 = vector.shape_cast %44 : vector<2x16x32xi32> to vector<32x32xi32>
    %46 = arith.cmpi sge, %41, %45 : vector<32x32xi32>
    %c16_i32_10 = arith.constant 16 : i32
    %47 = vector.broadcast %c16_i32_10 : i32 to vector<32x32xi32>
    %48 = arith.addi %45, %47 : vector<32x32xi32>
    %49 = arith.cmpi slt, %41, %48 : vector<32x32xi32>
    %50 = arith.andi %46, %49 : vector<32x32xi1>
    %cst_11 = arith.constant 0.000000e+00 : f32
    %51 = vector.broadcast %cst_11 : f32 to vector<32x32xf32>
    %52 = arith.select %50, %40, %51 : vector<32x32xi1>, vector<32x32xf32>
    %53 = arith.truncf %52 : vector<32x32xf32> to vector<32x32xbf16>
    %54 = vector.shape_cast %22 : vector<2x16x16xf32> to vector<32x16xf32>
    %55 = arith.truncf %54 : vector<32x16xf32> to vector<32x16xbf16>
    %c0_12 = arith.constant 0 : index
    %c0_13 = arith.constant 0 : index
    %56 = vector.load %arg2[%c0_12, %c0_13] : memref<16x128xbf16, #tpu.memory_space<vmem>>, vector<16x128xbf16>
    %c0_14 = arith.constant 0 : index
    %c0_15 = arith.constant 0 : index
    %57 = vector.load %arg4[%c0_14, %c0_15] : memref<128x128xbf16, #tpu.memory_space<vmem>>, vector<128x128xbf16>
    %c0_16 = arith.constant 0 : index
    %c0_17 = arith.constant 0 : index
    %58 = vector.load %arg3[%c0_16, %c0_17] : memref<1x128xf32, #tpu.memory_space<vmem>>, vector<1x128xf32>
    %c0_18 = arith.constant 0 : index
    %c0_19 = arith.constant 0 : index
    %59 = vector.load %arg5[%c0_18, %c0_19] : memref<1x128xf32, #tpu.memory_space<vmem>>, vector<1x128xf32>
    %cst_20 = arith.constant dense<0.000000e+00> : vector<32x128xf32>
    %60 = tpu.matmul %55, %56, %cst_20 {dimension_numbers = #tpu.dot_dimension_numbers<[1], [0], [0], [1], [0, 0, 1, 1], [], []>} : vector<32x16xbf16>, vector<16x128xbf16>, vector<32x128xf32> -> vector<32x128xf32>
    %61 = arith.truncf %60 : vector<32x128xf32> to vector<32x128xbf16>
    %cst_21 = arith.constant dense<0.000000e+00> : vector<32x128xf32>
    %62 = tpu.matmul %53, %61, %cst_21 {dimension_numbers = #tpu.dot_dimension_numbers<[1], [0], [0], [1], [0, 0, 1, 1], [], []>} : vector<32x32xbf16>, vector<32x128xbf16>, vector<32x128xf32> -> vector<32x128xf32>
    %63 = vector.broadcast %58 : vector<1x128xf32> to vector<32x128xf32>
    %64 = arith.addf %62, %63 : vector<32x128xf32>
    %cst_22 = arith.constant 0.000000e+00 : f32
    %65 = vector.broadcast %cst_22 : f32 to vector<32x128xf32>
    %66 = arith.maximumf %64, %65 : vector<32x128xf32>
    %67 = arith.truncf %66 : vector<32x128xf32> to vector<32x128xbf16>
    %cst_23 = arith.constant dense<0.000000e+00> : vector<32x128xf32>
    %68 = tpu.matmul %67, %57, %cst_23 {dimension_numbers = #tpu.dot_dimension_numbers<[1], [0], [0], [1], [0, 0, 1, 1], [], []>} : vector<32x128xbf16>, vector<128x128xbf16>, vector<32x128xf32> -> vector<32x128xf32>
    %69 = arith.truncf %68 : vector<32x128xf32> to vector<32x128xbf16>
    %cst_24 = arith.constant dense<0.000000e+00> : vector<32x128xf32>
    %70 = tpu.matmul %53, %69, %cst_24 {dimension_numbers = #tpu.dot_dimension_numbers<[1], [0], [0], [1], [0, 0, 1, 1], [], []>} : vector<32x32xbf16>, vector<32x128xbf16>, vector<32x128xf32> -> vector<32x128xf32>
    %71 = vector.broadcast %59 : vector<1x128xf32> to vector<32x128xf32>
    %72 = arith.addf %70, %71 : vector<32x128xf32>
    %cst_25 = arith.constant 0.000000e+00 : f32
    %73 = vector.broadcast %cst_25 : f32 to vector<32x128xf32>
    %74 = arith.maximumf %72, %73 : vector<32x128xf32>
    %75 = vector.shape_cast %74 : vector<32x128xf32> to vector<2x16x128xf32>
    %c0_26 = arith.constant 0 : index
    %c0_27 = arith.constant 0 : index
    %c0_28 = arith.constant 0 : index
    %76 = vector.load %arg6[%c0_26, %c0_27, %c0_28] : memref<2x16x128xf32, #tpu.memory_space<vmem>>, vector<2x16x128xf32>
    tpu.vector_store %arg6[%c0_26, %c0_27, %c0_28], %75 {strides = array<i32>} : memref<2x16x128xf32, #tpu.memory_space<vmem>>, vector<2x16x128xf32>,
    return
  }
  func.func @transform_0(%arg0: i32) -> (i32, i32, i32) {
    %c0_i32 = arith.constant 0 : i32
    %c0_i32_0 = arith.constant 0 : i32
    %c0_i32_1 = arith.constant 0 : i32
    return %arg0, %c0_i32, %c0_i32_0 : i32, i32, i32
  }
  func.func @transform_1(%arg0: i32) -> (i32, i32) {
    %c0_i32 = arith.constant 0 : i32
    %c0_i32_0 = arith.constant 0 : i32
    %c0_i32_1 = arith.constant 0 : i32
    return %c0_i32, %c0_i32_0 : i32, i32
  }
  func.func @transform_2(%arg0: i32) -> (i32, i32) {
    %c0_i32 = arith.constant 0 : i32
    %c0_i32_0 = arith.constant 0 : i32
    %c0_i32_1 = arith.constant 0 : i32
    return %c0_i32, %c0_i32_0 : i32, i32
  }
  func.func @transform_3(%arg0: i32) -> (i32, i32) {
    %c0_i32 = arith.constant 0 : i32
    %c0_i32_0 = arith.constant 0 : i32
    %c0_i32_1 = arith.constant 0 : i32
    return %c0_i32, %c0_i32_0 : i32, i32
  }
  func.func @transform_4(%arg0: i32) -> (i32, i32) {
    %c0_i32 = arith.constant 0 : i32
    %c0_i32_0 = arith.constant 0 : i32
    %c0_i32_1 = arith.constant 0 : i32
    return %c0_i32, %c0_i32_0 : i32, i32
  }
  func.func @transform_5(%arg0: i32) -> (i32, i32, i32) {
    %c0_i32 = arith.constant 0 : i32
    %c0_i32_0 = arith.constant 0 : i32
    %c0_i32_1 = arith.constant 0 : i32
    return %arg0, %c0_i32, %c0_i32_0 : i32, i32, i32
  }
}

</mosaic_0001>

<bundles_post_ra>
// kernel: tpu_custom_call.1
= control target key start
LH: loop header
LB: loop body
LE: loop exit
PB: predicated region body
PF: predicated region fallthrough
CT: control target
= control target key end

     0   :  { %10 = vsyncpa [#allocation3], 0  ;;  %s1792_s0 = inlined_call_operand.hbm [shape: f32[8,8,16], index: 0, kind: input, shape index: {}]   ;;  %s1793_s1 = inlined_call_operand.hbm [shape: bf16[16,128], index: 1, kind: input, shape index: {}]   ;;  %s1794_s2 = inlined_call_operand.vmem [shape: f32[1,128], index: 2, kind: input, shape index: {}]   ;;  %s1795_s3 = inlined_call_operand.hbm [shape: bf16[128,128], index: 3, kind: input, shape index: {}]   ;;  %s1796_s4 = inlined_call_operand.vmem [shape: f32[1,128], index: 4, kind: input, shape index: {}]   ;;  %s1797_s5 = inlined_call_operand.hbm [shape: f32[8,16,128], index: 5, kind: output, shape index: {}]  }
   0x1   :  { %12 = vsyncpa [#allocation3 + $0x1], 0 }
   0x2   :  { %13 = vsyncpa [#allocation6], 0 }
   0x3   :  { %14 = vsyncpa [#allocation4], 0 }
   0x4   :  { %16 = vsyncpa [#allocation4 + $0x1], 0  ;;  %s1531_s18 = smov 0   ;;  %s1533_s19 = smov 0  }
   0x5   :  { %s1535_s20 = smov 0   ;;  %s1537_s21 = smov 0  }
   0x6 LB: > { %s1552_s22 = sadd.s32 4294967295, %s1487_s21   ;;  %s1097_s23 = sadd.s32 4294967294, %s1487_s21   ;;  %s1487_s21 = sphi %s1537_s21, %s1816_s21   ;;  %s1483_s20 = sphi %s1535_s20, %s1815_s20   ;;  %s1479_s19 = sphi %s1533_s19, %s1814_s19   ;;  %s1475_s18 = sphi %s1531_s18, %s1813_s18  }
   0x7   : > { %p42_p0 = scmp.ne.s32.totalorder %s1479_s19, %s1475_s18  ;;  %p1798_p1 = scmp.eq.s32.totalorder %s1552_s22, 0 }
   0x8   : > { %p156_p3 = scmp.eq.s32.totalorder %s1097_s23, 3  ;;  %p1098_p5 = scmp.ge.s32.totalorder %s1487_s21, 1 }
   0x9   : > { %p1561_p4 = por %p1798_p1, %p42_p0  ;;  %p163_p7 = scmp.lt.s32.totalorder %s1487_s21, 5 }
   0xa   : > { %p1566_p6 = por %p156_p3, %p42_p0  ;;  %s1489_s27 = smov [#allocation5]  }
   0xb   : > { %s1801_s24 = scalar_select %p1561_p4, 1, 0 }
   0xc   : > { %s1802_s25 = scalar_select %p1566_p6, 1, 0 }
   0xd   : > { %p1571_p8 = pnand %p1098_p5, %p163_p7  ;;  %s175_s28 = sshll.u32 %s1489_s27, 4  ;;  %s176_s28 = int_to_ptr.vmem [resolvable:$true] %s175_s28 }
   0xe   : > { %s1490_s30 = smov [#allocation7]   ;;  %s1331_s9 = scalar_lea.hbm %s1793_s1, 128 }
   0xf   : > { %s1803_s26 = scalar_select %p1571_p8, 1, 0 }
  0x10   : > { %p1237_p9 = pneg %p1571_p8  ;;  %s191_s6 = sshll.u32 %s1490_s30, 4  ;;  %s1583_s6 = int_to_ptr.vmem [resolvable:$true] %s191_s6 }
  0x11   : > { %p1332_p11 = scmp.ne.s32.totalorder %s1793_s1, %s1331_s9  ;;  %p1338_p3 = scmp.lt.u32.totalorder %s1331_s9, %s1793_s1 }
  0x12   : > { %p1579_p10 = pnand %p1237_p9, %p1798_p1 }
  0x14   : > { %p1333_p12 = pneg %p1579_p10 }
  0x16   : > { %p1334_p13 = pnand %p1333_p12, %p1332_p11 }
  0x18   : > { %p1335_p0 = pneg %p1334_p13 }
  0x1a   : > { %p1340_p5 = pnand %p1338_p3, %p1335_p0 }
  0x1c   : > { %1343 = shalt.err (!%p1340_p5)
}
  0x1d   : > { %s1344_s14 = scalar_lea.vmem %s176_s28, 128  ;;  %p1352_p2 = scmp.lt.s32.totalorder %s176_s28, %s176_s28 }
  0x1e   : > { %p1345_p7 = scmp.ne.s32.totalorder %s176_s28, %s1344_s14  ;;  %p1353_p6 = scmp.lt.s32.totalorder %s1344_s14, %s1344_s14 }
  0x20   : > { %p1347_p9 = pnand %p1345_p7, %p1333_p12  ;;  %p1354_p4 = por %p1353_p6, %p1352_p2 }
  0x22   : > { %p1348_p1 = pneg %p1347_p9 }
  0x24   : > { %p1355_p8 = pnand %p1354_p4, %p1348_p1 }
  0x26   : > { %1358 = shalt.err (!%p1355_p8)
}
  0x27   : > { %s1491_s15 = smov 64   ;;  %s1492_s16 = smov 4  }
  0x28   : > { %1240 = dma.hbm_to_vmem [thread:$0]  (!%p1579_p10), %s1793_s1, 128, %s176_s28, [#allocation6], %s1491_s15, %s1491_s15, %s1492_s16  }
  0x29   : > { %s1359_s7 = scalar_lea.hbm %s1795_s3, 1024 }
  0x2a   : > { %p1360_p11 = scmp.ne.s32.totalorder %s1795_s3, %s1359_s7  ;;  %p1366_p4 = scmp.lt.u32.totalorder %s1359_s7, %s1795_s3 }
  0x2c   : > { %p1362_p1 = pnand %p1360_p11, %p1333_p12 }
  0x2e   : > { %p1363_p2 = pneg %p1362_p1 }
  0x30   : > { %p1368_p6 = pnand %p1366_p4, %p1363_p2 }
  0x32   : > { %1371 = shalt.err (!%p1368_p6)
}
  0x33   : > { %s1372_s28 = scalar_lea.vmem %s1583_s6, 1024  ;;  %p1380_p3 = scmp.lt.s32.totalorder %s1583_s6, %s1583_s6 }
  0x34   : > { %p1373_p8 = scmp.ne.s32.totalorder %s1583_s6, %s1372_s28  ;;  %p1381_p5 = scmp.lt.s32.totalorder %s1372_s28, %s1372_s28 }
  0x36   : > { %p1375_p13 = pnand %p1373_p8, %p1333_p12  ;;  %p1382_p7 = por %p1381_p5, %p1380_p3 }
  0x38   : > { %p1376_p0 = pneg %p1375_p13 }
  0x3a   : > { %p1383_p9 = pnand %p1382_p7, %p1376_p0 }
  0x3c   : > { %1386 = shalt.err (!%p1383_p9)
}
  0x3d   : > { %1243 = dma.hbm_to_vmem [thread:$0]  (!%p1579_p10), %s1795_s3, 1024, %s1583_s6, [#allocation6], %s1491_s15, %s1491_s15, %s1492_s16  }
  0x3e   : > { %s1633_s14 = sadd.s32 1, %s1487_s21   ;;  %s29_s29 = sadd.s32 1, %s1483_s20 }
  0x3f   : > { %s26_s17 = ssub.s32 %s1487_s21, %s1633_s14  ;;  %p36_p12 = scmp.ne.s32.totalorder %s1483_s20, %s1479_s19 }
  0x40   : > { %p27_p11 = scmp.eq.s32.totalorder %s26_s17, 0  ;;  %p37_p1 = scmp.eq.s32.totalorder %s1487_s21, 0 }
  0x41   : > { %p1805_p2 = scmp.eq.s32.totalorder %s1552_s22, 3  ;;  %p1254_p6 = scmp.lt.s32.totalorder %s1487_s21, 4 }
  0x42   : > { %s1649_s27 = scalar_select %p27_p11, %s1483_s20, %s29_s29  }
  0x43   : > { %p1643_p4 = por %p1805_p2, %p36_p12  ;;  %p38_p8 = por %p37_p1, %p36_p12 }
  0x44   : > { %s208_s30 = sand.u32 1, %s1483_s20   ;;  %s1143_s6 = sshll.u32 %s1487_s21, 8 }
  0x45   : > { %s1102_s7 = sshll.u32 %s208_s30, 4  ;;  %s1656_s8 = scalar_lea.hbm %s1792_s0, %s1143_s6 }
  0x46   : > { %s212_s9 = scalar_lea.vmem [#allocation2], %s1102_s7  ;;  %p1660_p10 = pnand %p1254_p6, %p38_p8 }
  0x47   : > { %s219_s10 = sshll.u32 %s212_s9, 4  ;;  %s1664_s28 = scalar_lea.sflag [#allocation3], %s208_s30  ;;  %s1658_s10 = int_to_ptr.vmem [resolvable:$true] %s219_s10 }
  0x48   : > { %s1387_s12 = scalar_lea.hbm %s1656_s8, 256  ;;  %p1389_p0 = pneg %p1660_p10 }
  0x49   : > { %p1388_p13 = scmp.ne.s32.totalorder %s1656_s8, %s1387_s12  ;;  %s1392_s17 = scalar_lea.hbm %s1792_s0, 1024 }
  0x4a   : > { %p1393_p7 = scmp.lt.u32.totalorder %s1656_s8, %s1792_s0  ;;  %p1394_p9 = scmp.lt.u32.totalorder %s1392_s17, %s1387_s12 }
  0x4b   : > { %p1390_p3 = pnand %p1389_p0, %p1388_p13  ;;  %p1396_p11 = scmp.lt.u32.totalorder %s1387_s12, %s1656_s8 }
  0x4c   : > { %p1395_p12 = por %p1394_p9, %p1393_p7 }
  0x4d   : > { %p1391_p5 = pneg %p1390_p3 }
  0x4e   : > { %p1397_p1 = por %p1396_p11, %p1395_p12 }
  0x50   : > { %p1398_p2 = pnand %p1397_p1, %p1391_p5 }
  0x52   : > { %1401 = shalt.err (!%p1398_p2)
}
  0x53   : > { %s1402_s30 = scalar_lea.vmem %s1658_s10, 256  ;;  %s1493_s15 = smov [#allocation2]  }
  0x54   : > { %p1403_p6 = scmp.ne.s32.totalorder %s1658_s10, %s1402_s30  ;;  %s1407_s16 = sshll.u32 %s1493_s15, 4  ;;  %s1408_s16 = int_to_ptr.vmem [resolvable:$false] %s1407_s16 }
  0x55   : > { %s1409_s9 = scalar_lea.vmem %s1408_s16, 512  ;;  %p1410_p3 = scmp.lt.s32.totalorder %s1658_s10, %s1408_s16 }
  0x56   : > { %p1405_p8 = pnand %p1403_p6, %p1389_p0  ;;  %p1411_p7 = scmp.lt.s32.totalorder %s1409_s9, %s1402_s30 }
  0x58   : > { %p1406_p13 = pneg %p1405_p8  ;;  %p1412_p9 = por %p1411_p7, %p1410_p3 }
  0x5a   : > { %p1413_p12 = pnand %p1412_p9, %p1406_p13 }
  0x5c   : > { %1416 = shalt.err (!%p1413_p12)
}
  0x5d   : > { %s1494_s12 = smov 128   ;;  %s1495_s13 = smov 8  }
  0x5e   : > { %1247 = dma.hbm_to_vmem [thread:$0]  (!%p1660_p10), %s1656_s8, 256, %s1658_s10, %s1664_s28, %s1494_s12, %s1494_s12, %s1495_s13  }
  0x5f   : > { %p1808_p0 = scmp.ne.s32.totalorder %s1803_s26, 0 }
  0x60   : > { %s1695_s29 = sand.u32 (!%p1808_p0), 1, %s1479_s19   ;;  %p1809_p5 = scmp.ne.s32.totalorder (!%p1808_p0), %s1801_s24, 0 }
  0x61   : > { %231 = sbr.rel (%p1808_p0) target bundleno = 1478 (0x5c6), region = 40  ;;  %s1106_s17 = sshll.u32 (!%p1808_p0), %s1695_s29, 4 }
  0x62   : > { %s234_s7 = scalar_lea.sflag (!%p1808_p0), [#allocation3], %s1695_s29  ;;  %s237_s6 = scalar_lea.vmem (!%p1808_p0), [#allocation2], %s1106_s17 }
  0x68   : > { %1462 = dma.done.wait (%p1809_p5), %s234_s7, 256  }
  0x69   : > { %1464 = vsyncadd (%p1809_p5), %s234_s7, 4294967040  ;;  %p1810_p11 = scmp.eq.s32.totalorder %s1552_s22, 0 }
  0x6b   : > { %1466 = dma.done.wait (%p1810_p11), [#allocation6], 1152   ;;  %p1811_p10 = pmov %p1810_p11 }
  0x6c   : > { %vm277_vm0 = vcmask 130048   ;;  %v275_v0 = vld [vmem:[%s237_s6] sm:$0xff]  ;;  %v276_v1 = vld [vmem:[%s237_s6 + $0x8] sm:$0xff]  ;;  %vm353_vm3 = vcmask 64512   ;;  %v560_v47 = vlaneseq  ;;  %v1496_v55 = vmov 0.0   ;;  %s1497_s24 = smov 16  }
  0x6d   : > { %1468 = vsyncadd (%p1811_p10), [#allocation6], 4294966144  ;;  %v278_v2 = vsel %vm277_vm0, %v275_v0, 0.0  ;;  %v285_v3 = vsel %vm277_vm0, %v276_v1, 0.0  ;;  %v1310_v46 = vld [vmem:[#allocation5] sm:$0xff]   ;;  %vm608_vm6 = vcmask 130112  }
  0x6e   : > { %v279_v4 = vrot.slane %v278_v2, 4  ;;  %v286_v5 = vrot.slane %v285_v3, 4  ;;  %v561_v48 = vshrl.u32 %v560_v47, 7  ;;  %v1711_v50 = vand.u32 127, %v560_v47  ;;  %s1109_s10 = sshll.u32 %s1695_s29, 5  ;;  %s1145_s16 = sshll.u32 %s1552_s22, 9 }
  0x6f   : > { %vm766_vm10 = vcmask 261120   ;;  %s271_s30 = scalar_lea.vmem [#allocation8], %s1109_s10  ;;  %s1749_s13 = scalar_lea.hbm %s1797_s5, %s1145_s16 }
  0x70   : > { %v280_v6 = vadd.f32 %v279_v4, %v278_v2  ;;  %v287_v7 = vadd.f32 %v286_v5, %v285_v3  ;;  %v562_v49 = vadd.s32 8, %v561_v48  ;;  %vm565_vm5 = vcmp.eq.s32.totalorder %v561_v48, %v1711_v50  ;;  %s1005_s15 = sshll.u32 %s271_s30, 4  ;;  %s991_s22 = scalar_lea.sflag [#allocation4], %s1695_s29  ;;  %s1744_s15 = int_to_ptr.vmem [resolvable:$true] %s1005_s15 }
  0x71   : > { %v1118_v59 = vsel %vm565_vm5, 1.0, %v1496_v55  ;;  %vm665_vm7 = vcmp.lt.s32.totalorder %v1711_v50, 16  ;;  %vm664_vm8 = vcmp.ge.s32.totalorder %v1711_v50, 16  ;;  %vm666_vm9 = vcmp.lt.s32.totalorder %v1711_v50, 32  ;;  %s1417_s17 = scalar_lea.vmem %s1744_s15, 512  ;;  %s1498_s7 = smov [#allocation8]  }
  0x72   : > { %v281_v8 = vrot.slane %v280_v6, 2  ;;  %v288_v9 = vrot.slane %v287_v7, 2  ;;  %vm566_vm4 = vcmp.eq.s32.totalorder %v562_v49, %v1711_v50  ;;  %vm668_vm11 = vmand %vm664_vm8, %vm666_vm9  ;;  %p1418_p1 = scmp.ne.s32.totalorder %s1744_s15, %s1417_s17  ;;  %s1421_s6 = sshll.u32 %s1498_s7, 4  ;;  %s1422_s6 = int_to_ptr.vmem [resolvable:$false] %s1421_s6 }
  0x73   : > { %v1119_v56 = vsel %vm566_vm4, 1.0, %v1496_v55  ;;  %p1424_p8 = scmp.lt.s32.totalorder %s1744_s15, %s1422_s6 }
  0x74   : > { %v282_v10 = vadd.f32 %v281_v8, %v280_v6  ;;  %v289_v11 = vadd.f32 %v288_v9, %v287_v7  ;;  %p1419_p2 = pnand %p1418_p1, %p1643_p4 }
  0x76   : > { %v283_v12 = vrot.slane %v282_v10, 1  ;;  %v290_v13 = vrot.slane %v289_v11, 1  ;;  %p1420_p6 = pneg %p1419_p2 }
  0x78   : > { %v284_v14 = vadd.f32 %v283_v12, %v282_v10  ;;  %v291_v15 = vadd.f32 %v290_v13, %v289_v11 }
  0x7a   : > { %v293_v16 = vmul.f32 0.125, %v284_v14  ;;  %v294_v17 = vmul.f32 0.125, %v291_v15  ;;  %v603_v14 = vadd.s32 4294967288, %v1711_v50 }
  0x7c   : > { %v295_v18 = vsub.f32 %v275_v0, %v293_v16  ;;  %v296_v19 = vsub.f32 %v276_v1, %v294_v17  ;;  %v606_v17 = vsub.s32 %v603_v14, %v561_v48 }
  0x7e   : > { %v297_v20 = vmul.f32 %v295_v18, %v295_v18  ;;  %v298_v21 = vmul.f32 %v296_v19, %v296_v19 }
  0x80   : > { %v299_v22 = vsel %vm277_vm0, %v297_v20, 0.0  ;;  %v306_v23 = vsel %vm277_vm0, %v298_v21, 0.0 }
  0x81   : > { %v300_v24 = vrot.slane %v299_v22, 4  ;;  %v307_v25 = vrot.slane %v306_v23, 4 }
  0x83   : > { %v301_v26 = vadd.f32 %v300_v24, %v299_v22  ;;  %v308_v27 = vadd.f32 %v307_v25, %v306_v23 }
  0x85   : > { %v302_v28 = vrot.slane %v301_v26, 2  ;;  %v309_v29 = vrot.slane %v308_v27, 2 }
  0x87   : > { %v303_v30 = vadd.f32 %v302_v28, %v301_v26  ;;  %v310_v31 = vadd.f32 %v309_v29, %v308_v27 }
  0x89   : > { %v304_v32 = vrot.slane %v303_v30, 1  ;;  %v311_v33 = vrot.slane %v310_v31, 1 }
  0x8b   : > { %v305_v34 = vadd.f32 %v304_v32, %v303_v30  ;;  %v312_v35 = vadd.f32 %v311_v33, %v310_v31 }
  0x8d   : > { %1319 = vrsqrt.f32 %v305_v34  ;;  %vm313_vm1 = vcmp.gt.f32.partialorder %v305_v34, 0.0  ;;  %vm314_vm2 = vcmp.gt.f32.partialorder %v312_v35, 0.0 }
  0x8e   : > { %1321 = vrsqrt.f32 %v312_v35  ;;  %v1311_v35 = vld [vmem:[#allocation7] sm:$0xff]  }
  0x8f   : > { %1197 = vmatprep.subr.bf16.mxu0 %v1311_v35 }
  0x90   : > { %1198 = vmatpush3.bf16.msra.mxu0 %v1311_v35 }
  0x97   : > { %v1320_v36 = vpop.eup %1319 }
  0x98   : > { %v1322_v37 = vpop.eup %1321  ;;  %v317_v38 = vsel %vm313_vm1, %v1320_v36, 0.0  ;;  %v1312_v36 = vld [vmem:[#allocation7 + $0x8] sm:$0xff]  }
  0x99   : > { %v319_v39 = vmul.f32 %v317_v38, %v295_v18  ;;  %v318_v40 = vsel %vm314_vm2, %v1322_v37, 0.0  ;;  %v601_v18 = vsub.s32 %v1711_v50, %v561_v48  ;;  %1199 = vmatprep.subr.bf16.mxu0 %v1312_v36  ;;  %v1317_v50 = vld [vmem:[#allocation7 + $0x30] sm:$0xff]  }
  0x9a   : > { %v320_v41 = vmul.f32 %v318_v40, %v296_v19  ;;  %1200 = vmatpush3.bf16.msra.mxu0 %v1312_v36 }
  0x9b   : > { %321 = vxpose.xlu0.b32.start.end [1/1] (short) (narrow) %v319_v39, 16  ;;  %1173 = vmatprep.subr.mxu1 %v319_v39 }
  0x9c   : > { %1174 = vmatpush3.msra.mxu1 %v319_v39 }
  0x9d   : > { %1178 = vmatprep.subr.mxu1 %v320_v41 }
  0xa0   : > { %435 = vxpose.xlu0.b32.start.end [1/1] (short) (narrow) %v320_v41, 16 }
 0x11b   : > { %v337_v42 = vpop.trf.xlu0 }
 0x11c   : > { %1175 = vmatprep.mubr.msk.f32.mxu1 %vm353_vm3, %v337_v42  ;;  %v1314_v42 = vld [vmem:[#allocation7 + $0x18] sm:$0xff]  }
 0x11f   : > { %v338_v43 = vpop.trf.xlu0 }
 0x120   : > { %1176 = vmatmul.mubr.msk.f32.vlgmr.msra.gmra.mrb[0].mxu1 %vm353_vm3, %v338_v43  ;;  %v1315_v43 = vld [vmem:[#allocation7 + $0x20] sm:$0xff]  }
 0x121   : > { %1179 = vmatpush3.msra.mxu1 %v320_v41  ;;  %v1313_v41 = vld [vmem:[#allocation7 + $0x10] sm:$0xff]  }
 0x122   : > { %1183 = vmatprep.subr.bf16.mxu1 %v1310_v46  ;;  %1201 = vmatprep.subr.bf16.mxu0 %v1313_v41 }
 0x123   : > { %v451_v44 = vpop.trf.xlu0  ;;  %1202 = vmatpush3.bf16.msra.mxu0 %v1313_v41 }
 0x124   : > { %1180 = vmatprep.mubr.msk.f32.mxu1 %vm353_vm3, %v451_v44  ;;  %1203 = vmatprep.subr.bf16.mxu0 %v1314_v42  ;;  %v1316_v44 = vld [vmem:[#allocation7 + $0x28] sm:$0xff]  }
 0x127   : > { %v452_v45 = vpop.trf.xlu0  ;;  %1204 = vmatpush3.bf16.msra.mxu0 %v1314_v42 }
 0x128   : > { %1181 = vmatmul.mubr.msk.f32.vlgmr.msra.gmra.mrb[2].mxu1 %vm353_vm3, %v452_v45  ;;  %1205 = vmatprep.subr.bf16.mxu0 %v1315_v43 }
 0x129   : > { %1184 = vmatpush3.bf16.msra.mxu1 %v1310_v46 }
 0x12b   : > { %1206 = vmatpush3.bf16.msra.mxu0 %v1315_v43 }
 0x12c   : > { %1207 = vmatprep.subr.bf16.mxu0 %v1316_v44 }
 0x12f   : > { %1208 = vmatpush3.bf16.msra.mxu0 %v1316_v44 }
 0x130   : > { %1209 = vmatprep.subr.bf16.mxu0 %v1317_v50 }
 0x133   : > { %1210 = vmatpush3.bf16.msra.mxu0 %v1317_v50 }
 0x1f3   : > { %v1177_v51 = vpop.f32.mrb[0].mxu1 }
 0x1f4   : > { %v1115_v52 = vclamps-f32 %v1177_v51, 1.0  ;;  %v426_v53 = vpop.f32.mrb[1].mxu1 }
 0x1f5   : > { %v1114_v54 = vclamps-f32 %v426_v53, 1.0 }
 0x1f6   : > { %v557_v57 = vand.u32 2147483647, %v1115_v52 }
 0x1f7   : > { %v556_v58 = vand.u32 2147483647, %v1114_v54 }
 0x1f8   : > { %v572_v60 = vadd.f32 %v1119_v56, %v557_v57 }
 0x1f9   : > { %v675_v61 = vpack.c.bf16 %v557_v57, %v556_v58  ;;  %v571_v63 = vadd.f32 %v1118_v59, %v556_v58 }
 0x1fa   : > { %v578_v62 = vsel %vm277_vm0, %v572_v60, 0.0 }
 0x1fb   : > { %579 = vadd.xlane.f32.xlu1 %v578_v62  ;;  %v1182_v0 = vpop.f32.mrb[2].mxu1  ;;  %1185 = vmatprep.mubr.msk.bf16.mxu1 %vm277_vm0, %v675_v61  ;;  %v575_v5 = vsel %vm277_vm0, %v571_v63, 0.0 }
 0x1fc   : > { %v1117_v1 = vclamps-f32 %v1182_v0, 1.0  ;;  %v539_v2 = vpop.f32.mrb[3].mxu1 }
 0x1fd   : > { %v1116_v3 = vclamps-f32 %v539_v2, 1.0 }
 0x1fe   : > { %v559_v4 = vand.u32 2147483647, %v1117_v1 }
 0x1ff   : > { %v558_v6 = vand.u32 2147483647, %v1116_v3  ;;  %576 = vadd.xlane.f32.xlu1 %v575_v5  ;;  %v1123_v5 = vld [vmem:[%s1794_s2] ss:$0 sm:$0xff] }
 0x200   : > { %v574_v7 = vadd.f32 %v1119_v56, %v559_v4 }
 0x201   : > { %v676_v8 = vpack.c.bf16 %v559_v4, %v558_v6  ;;  %v573_v9 = vadd.f32 %v1118_v59, %v558_v6  ;;  %v1318_v4 = vld [vmem:[#allocation7 + $0x38] sm:$0xff]  }
 0x202   : > { %v584_v10 = vsel %vm277_vm0, %v574_v7, 0.0  ;;  %1211 = vmatprep.subr.bf16.mxu0 %v1318_v4 }
 0x203   : > { %585 = vadd.xlane.f32.xlu0 %v584_v10  ;;  %1186 = vmatmul.mubr.msk.bf16.vlgmr.msra.gmra.mrb[4].mxu1 %vm277_vm0, %v676_v8  ;;  %v581_v11 = vsel %vm277_vm0, %v573_v9, 0.0 }
 0x204   : > { %582 = vadd.xlane.f32.xlu1 %v581_v11  ;;  %1212 = vmatpush3.bf16.msra.mxu0 %v1318_v4 }
 0x288   : > { %v580_v12 = vpop.xlane.xlu1 %579 }
 0x289   : > { %1323 = vrsqrt.f32 %v580_v12 }
 0x28c   : > { %v577_v13 = vpop.xlane.xlu1 %576 }
 0x28d   : > { %1325 = vrsqrt.f32 %v577_v13 }
 0x290   : > { %v586_v15 = vpop.xlane.xlu0 %585 }
 0x291   : > { %1327 = vrsqrt.f32 %v586_v15  ;;  %v583_v16 = vpop.xlane.xlu1 %582 }
 0x292   : > { %1329 = vrsqrt.f32 %v583_v16 }
 0x293   : > { %v1324_v19 = vpop.eup %1323 }
 0x294   : > { %v607_v23 = vrot.slane %v1324_v19, %v606_v17  ;;  %v592_v24 = vmul.f32 %v1324_v19, %v572_v60 }
 0x297   : > { %v1326_v20 = vpop.eup %1325 }
 0x298   : > { %v591_v21 = vmul.f32 %v1326_v20, %v571_v63  ;;  %v602_v22 = vrot.slane %v1326_v20, %v601_v18 }
 0x29a   : > { %v609_v25 = vsel %vm608_vm6, %v607_v23, %v602_v22 }
 0x29b   : > { %v1328_v26 = vpop.eup %1327  ;;  %v639_v27 = vmul.f32 %v609_v25, %v591_v21  ;;  %v640_v28 = vmul.f32 %v609_v25, %v592_v24 }
 0x29c   : > { %v1330_v29 = vpop.eup %1329  ;;  %v617_v30 = vrot.slane %v1328_v26, %v606_v17  ;;  %v594_v34 = vmul.f32 %v1328_v26, %v574_v7  ;;  %v1134_v26 = vld [vmem:[%s1796_s4] ss:$0 sm:$0xff] }
 0x29d   : > { %v1300_v31 = vpack.i.bf16 %v640_v28, %v639_v27  ;;  %v593_v32 = vmul.f32 %v1330_v29, %v573_v9  ;;  %v613_v33 = vrot.slane %v1330_v29, %v601_v18 }
 0x29f   : > { %1301 = vrot.lane.b32.xlu1 %v1300_v31, %s1497_s24  ;;  %v618_v37 = vsel %vm608_vm6, %v617_v30, %v613_v33 }
 0x2a0   : > { %v641_v38 = vmul.f32 %v618_v37, %v593_v32  ;;  %v642_v39 = vmul.f32 %v618_v37, %v594_v34 }
 0x2a2   : > { %v1305_v40 = vpack.i.bf16 %v642_v39, %v641_v38 }
 0x2a4   : > { %1306 = vrot.lane.b32.xlu1 %v1305_v40, %s1497_s24  ;;  %s1423_s24 = scalar_lea.vmem %s1422_s6, 1024 }
 0x2a5   : > { %p1425_p13 = scmp.lt.s32.totalorder %s1423_s24, %s1417_s17 }
 0x2a7   : > { %p1426_p3 = por %p1425_p13, %p1424_p8 }
 0x2a9   : > { %p1427_p7 = pnand %p1426_p3, %p1420_p6 }
 0x2d6   : > { %v1187_v45 = vpop.f32.mrb[4].mxu1 }
 0x2d7   : > { %v743_v46 = vpop.f32.mrb[5].mxu1 }
 0x2d8   : > { %v1188_v47 = vpop.f32.mrb[6].mxu1 }
 0x2d9   : > { %v759_v48 = vpack.c.bf16 %v1188_v47, %v1187_v45  ;;  %v746_v49 = vpop.f32.mrb[7].mxu1 }
 0x2da   : > { %v758_v51 = vpack.c.bf16 %v746_v49, %v743_v46 }
 0x2dc   : > { %1189 = vmatprep.subr.bf16.mxu1 %v758_v51 }
 0x2dd   : > { %1190 = vmatpush3.bf16.msra.mxu1 %v758_v51 }
 0x2de   : > { %1191 = vmatprep.subr.bf16.mxu1 %v759_v48 }
 0x2e1   : > { %1192 = vmatpush3.bf16.msra.mxu1 %v759_v48 }
 0x311   : > { %v1302_v52 = vpop.permute.xlu1 %1301 }
 0x312   : > { %v1304_v53 = vunpack.i.h.bf16 %v1302_v52  ;;  %v1303_v54 = vunpack.i.l.bf16 %v1302_v52 }
 0x314   : > { %v660_v55 = vsel %vm277_vm0, %v640_v28, %v1304_v53  ;;  %v659_v56 = vsel %vm277_vm0, %v639_v27, %v1303_v54 }
 0x315   : > { %v670_v57 = vsel %vm665_vm7, %v660_v55, 0.0  ;;  %v669_v58 = vsel %vm665_vm7, %v659_v56, 0.0 }
 0x316   : > { %v1307_v59 = vpop.permute.xlu1 %1306  ;;  %v673_v60 = vpack.c.bf16 %v670_v57, %v669_v58 }
 0x317   : > { %v1309_v61 = vunpack.i.h.bf16 %v1307_v59  ;;  %v1308_v62 = vunpack.i.l.bf16 %v1307_v59 }
 0x318   : > { %1193 = vmatprep.mubr.msk.bf16.mxu1 %vm766_vm10, %v673_v60 }
 0x319   : > { %v662_v63 = vsel %vm277_vm0, %v642_v39, %v1309_v61  ;;  %v661_v0 = vsel %vm277_vm0, %v641_v38, %v1308_v62 }
 0x31a   : > { %v672_v1 = vsel %vm668_vm11, %v662_v63, 0.0  ;;  %v671_v2 = vsel %vm668_vm11, %v661_v0, 0.0 }
 0x31b   : > { %v674_v3 = vpack.c.bf16 %v672_v1, %v671_v2 }
 0x31d   : > { %1194 = vmatmul.mubr.msk.bf16.vlgmr.msra.gmra.mrb[8].mxu1 %vm766_vm10, %v674_v3 }
 0x31e   : > { %1221 = vmatprep.mubr.msk.bf16.mxu1 %vm766_vm10, %v673_v60 }
 0x3f0   : > { %v1195_v6 = vpop.f32.mrb[8].mxu1 }
 0x3f1   : > { %v816_v7 = vadd.f32 %v1195_v6, %v1123_v5  ;;  %v807_v8 = vpop.f32.mrb[9].mxu1 }
 0x3f2   : > { %v808_v9 = vadd.f32 %v1123_v5, %v807_v8  ;;  %v1196_v10 = vpop.f32.mrb[10].mxu1 }
 0x3f3   : > { %v819_v11 = vadd.f32 %v1196_v10, %v1123_v5  ;;  %v810_v12 = vpop.f32.mrb[11].mxu1  ;;  %v824_v14 = vmax.f32 %v816_v7, 0.0 }
 0x3f4   : > { %v811_v13 = vadd.f32 %v1123_v5, %v810_v12  ;;  %v822_v16 = vmax.f32 %v808_v9, 0.0 }
 0x3f5   : > { %v825_v15 = vmax.f32 %v819_v11, 0.0 }
 0x3f6   : > { %v823_v17 = vmax.f32 %v811_v13, 0.0 }
 0x3f7   : > { %v827_v18 = vpack.c.bf16 %v825_v15, %v824_v14 }
 0x3f8   : > { %v826_v19 = vpack.c.bf16 %v823_v17, %v822_v16 }
 0x3fa   : > { %1213 = vmatprep.mubr.bf16.mxu0 %v826_v19 }
 0x3fb   : > { %1214 = vmatmul.mubr.bf16.vlgmr.msra.gmra.mrb[0].mxu0 %v827_v18 }
 0x4ce   : > { %v1215_v20 = vpop.f32.mrb[0].mxu0 }
 0x4cf   : > { %v910_v21 = vpop.f32.mrb[1].mxu0 }
 0x4d0   : > { %v1216_v22 = vpop.f32.mrb[2].mxu0 }
 0x4d1   : > { %v926_v23 = vpack.c.bf16 %v1216_v22, %v1215_v20  ;;  %v913_v24 = vpop.f32.mrb[3].mxu0 }
 0x4d2   : > { %v925_v25 = vpack.c.bf16 %v913_v24, %v910_v21 }
 0x4d4   : > { %1217 = vmatprep.subr.bf16.mxu1 %v925_v25 }
 0x4d5   : > { %1218 = vmatpush3.bf16.msra.mxu1 %v925_v25 }
 0x4d6   : > { %1219 = vmatprep.subr.bf16.mxu1 %v926_v23 }
 0x4d9   : > { %1220 = vmatpush3.bf16.msra.mxu1 %v926_v23 }
 0x4dc   : > { %1222 = vmatmul.mubr.msk.bf16.vlgmr.msra.gmra.mrb[12].mxu1 %vm766_vm10, %v674_v3 }
 0x5af   : > { %v1223_v27 = vpop.f32.mrb[12].mxu1 }
 0x5b0   : > { %v976_v28 = vadd.f32 %v1223_v27, %v1134_v26  ;;  %v967_v29 = vpop.f32.mrb[13].mxu1 }
 0x5b1   : > { %v968_v30 = vadd.f32 %v1134_v26, %v967_v29  ;;  %v1224_v31 = vpop.f32.mrb[14].mxu1 }
 0x5b2   : > { %v984_v32 = vmax.f32 %v976_v28, 0.0  ;;  %v979_v33 = vadd.f32 %v1224_v31, %v1134_v26  ;;  %v970_v34 = vpop.f32.mrb[15].mxu1 }
 0x5b3   : > { %v982_v35 = vmax.f32 %v968_v30, 0.0  ;;  %v971_v36 = vadd.f32 %v1134_v26, %v970_v34 }
 0x5b4   : > { %988 = vst [vmem:[%s271_s30 + $0x10] sm:$0xff] %v984_v32  ;;  %v985_v37 = vmax.f32 %v979_v33, 0.0 }
 0x5b5   : > { %986 = vst [vmem:[%s271_s30] sm:$0xff] %v982_v35  ;;  %v983_v38 = vmax.f32 %v971_v36, 0.0 }
 0x5b6   : > { %989 = vst [vmem:[%s271_s30 + $0x18] sm:$0xff] %v985_v37 }
 0x5b7   : > { %987 = vst [vmem:[%s271_s30 + $0x8] sm:$0xff] %v983_v38 }
 0x5b8   : > { %1430 = shalt.err (!%p1427_p7)
}
 0x5b9   : > { %s1431_s26 = scalar_lea.hbm %s1749_s13, 512  ;;  %s1435_s11 = scalar_lea.hbm %s1797_s5, 2048 }
 0x5ba   : > { %p1432_p9 = scmp.ne.s32.totalorder %s1749_s13, %s1431_s26  ;;  %p1436_p5 = scmp.lt.u32.totalorder %s1749_s13, %s1797_s5 }
 0x5bb   : > { %p1437_p11 = scmp.lt.u32.totalorder %s1435_s11, %s1431_s26  ;;  %p1439_p1 = scmp.lt.u32.totalorder %s1431_s26, %s1749_s13 }
 0x5bc   : > { %p1433_p12 = pnand %p1432_p9, %p1643_p4 }
 0x5bd   : > { %p1438_p10 = por %p1437_p11, %p1436_p5 }
 0x5be   : > { %p1434_p0 = pneg %p1433_p12 }
 0x5bf   : > { %p1440_p2 = por %p1439_p1, %p1438_p10 }
 0x5c1   : > { %p1441_p6 = pnand %p1440_p2, %p1434_p0 }
 0x5c3   : > { %1444 = shalt.err (!%p1441_p6)
}
 0x5c4   : > { %s1499_s16 = smov 128   ;;  %s1500_s9 = smov 8  }
 0x5c5   : > { %1235 = dma.vmem_to_hbm [thread:$0]  (%p1643_p4), %s1744_s15, 512, %s1749_s13, %s991_s22, %s1499_s16, %s1499_s16, %s1500_s9  }
 0x5c6 PF: > { %p1257_p8 = scmp.ge.s32.totalorder %s1487_s21, 2  ;;  %s1020_s12 = sand.u32 1, %s1475_s18  }
 0x5c7   : > { %p1812_p13 = scmp.ne.s32.totalorder %s1802_s25, 0  ;;  %s1021_s17 = scalar_lea.sflag [#allocation4], %s1020_s12 }
 0x5c9   : > { %p1249_p3 = pnand %p1257_p8, %p1812_p13 }
 0x5cb   : > { %1470 = dma.done.wait (!%p1249_p3), %s1021_s17, 512  }
 0x5cc   : > { %1472 = vsyncadd (!%p1249_p3), %s1021_s17, 4294966784  ;;  %p19_p7 = scmp.ge.s32.totalorder %s1633_s14, 6   ;;  %s1813_s18 = smov %s1479_s19 }
 0x5cd   : > { %s1814_s19 = smov %s1483_s20  ;;  %s1815_s20 = smov %s1649_s27 }
 0x5ce   : > { %s1816_s21 = smov %s1633_s14  ;;  %21 = sbr.rel (!%p19_p7) target bundleno = 6 (0x6), region = 93 }
 0x5d5   :  { %1026 = vsyncpa [#allocation3], 1 }
 0x5d6   :  { %1028 = vsyncpa [#allocation3 + $0x1], 1 }
 0x5d7   :  { %1029 = vsyncpa [#allocation6], 1 }
 0x5d8   :  { %1030 = vsyncpa [#allocation4], 1 }
 0x5d9   :  { %1032 = vsyncpa [#allocation4 + $0x1], 1 }

</bundles_post_ra>
